<compile_context>
chip_gen: v6e
topology: v6e:2x2x1
jax: 0.10.0
libtpu: 0.0.40
codegen_flags: <defaults>
</compile_context>

<pallas_src>
import functools

import jax
import jax.numpy as jnp
from jax.experimental import pallas as pl
from jax.experimental.pallas import tpu as pltpu


_VMEM = pl.BlockSpec(memory_space=pltpu.MemorySpace.VMEM)


# ---------------------------------------------------------------------------
# Fused forward kernel
# ---------------------------------------------------------------------------

def _make_vae_kernel(n_pre, n_dec, latent):
    """Build the fused VAE forward kernel for a fixed layer structure."""

    def kernel(*refs):
        it = iter(refs)
        x_ref = next(it)
        eps_ref = next(it)
        pre = [(next(it), next(it)) for _ in range(n_pre)]          # (W^T, b) pairs
        w_ml_ref, b_ml_ref = next(it), next(it)                     # fused mu|logvar
        dec = [(next(it), next(it)) for _ in range(n_dec)]          # (W^T, b) pairs
        w_out_ref, b_out_ref = next(it), next(it)                   # final linear
        out_ref, mu_ref, logvar_ref = next(it), next(it), next(it)  # outputs

        # ---- pre_encoder: Linear + ReLU stack --------------------------------
        h = x_ref[...]
        for w_ref, b_ref in pre:
            h = jnp.maximum(
                jnp.dot(h, w_ref[...], preferred_element_type=jnp.float32)
                + b_ref[...], 0.0)

        # ---- fused mu / logvar projection (one MXU push, then split) ---------
        ml = (jnp.dot(h, w_ml_ref[...], preferred_element_type=jnp.float32)
              + b_ml_ref[...])
        mu = ml[:, :latent]
        logvar = ml[:, latent:]
        mu_ref[...] = mu.astype(mu_ref.dtype)
        logvar_ref[...] = logvar.astype(logvar_ref.dtype)

        # ---- reparametrize: z = eps * exp(0.5 * logvar) + mu ------------------
        z = eps_ref[...] * jnp.exp(0.5 * logvar) + mu

        # ---- decoder: Linear + ReLU stack -------------------------------------
        d = z
        for w_ref, b_ref in dec:
            d = jnp.maximum(
                jnp.dot(d, w_ref[...], preferred_element_type=jnp.float32)
                + b_ref[...], 0.0)

        # ---- final Linear + Softmax(dim=0)  (softmax over the batch axis) -----
        y = (jnp.dot(d, w_out_ref[...], preferred_element_type=jnp.float32)
             + b_out_ref[...])
        y = y - jnp.max(y, axis=0, keepdims=True)
        e = jnp.exp(y)
        inv = pl.reciprocal(jnp.sum(e, axis=0, keepdims=True), approx=True)
        out_ref[...] = (e * inv).astype(out_ref.dtype)

    return kernel


def build_vae_forward(layers, dtype=jnp.float32):
    """Returns a jitted forward(params, x, eps) -> (out, mu, logvar)."""
    n_pre = len(layers) - 2
    n_dec = len(layers) - 2
    latent = layers[-1]
    kernel = _make_vae_kernel(n_pre, n_dec, latent)

    def forward(params, x, eps):
        B = x.shape[0]
        args = [x, eps]
        for w, b in params["pre_encoder"]:
            args += [w, b]
        args += [params["encode_mulogvar"][0], params["encode_mulogvar"][1]]
        for w, b in params["decoder"]:
            args += [w, b]
        args += [params["decoder_out"][0], params["decoder_out"][1]]

        out_shapes = (
            jax.ShapeDtypeStruct((B, layers[0]), dtype),   # reconstruction
            jax.ShapeDtypeStruct((B, latent), dtype),      # mu
            jax.ShapeDtypeStruct((B, latent), dtype),      # logvar
        )
        return pl.pallas_call(
            kernel,
            out_shape=out_shapes,
            in_specs=[_VMEM] * len(args),
            out_specs=(_VMEM, _VMEM, _VMEM),
        )(*args)

    return jax.jit(forward)


# ---------------------------------------------------------------------------
# Parameter init (PyTorch-style), weights stored pre-transposed [in, out]
# ---------------------------------------------------------------------------

def _init_linear_t(key, in_f, out_f, dtype=jnp.float32):
    kw, kb = jax.random.split(key)
    bound = 1.0 / (in_f ** 0.5)
    w_t = jax.random.uniform(kw, (in_f, out_f), dtype, -bound, bound)  # W^T
    b = jax.random.uniform(kb, (1, out_f), dtype, -bound, bound)
    return w_t, b


def init_vae_params(key, layers, dtype=jnp.float32):
    n_pre = len(layers) - 2
    n_dec = len(layers) - 2
    keys = jax.random.split(key, n_pre + 2 + n_dec + 1)
    k = 0
    params = {"pre_encoder": [], "decoder": []}
    # pre_encoder: Linear(layers[i], layers[i+1]) + ReLU
    for i in range(n_pre):
        params["pre_encoder"].append(
            _init_linear_t(keys[k], layers[i], layers[i + 1], dtype)); k += 1
    # encode_mu / encode_sig, fused into one [hidden, 2*latent] projection
    w_mu, b_mu = _init_linear_t(keys[k], layers[-2], layers[-1], dtype); k += 1
    w_sig, b_sig = _init_linear_t(keys[k], layers[-2], layers[-1], dtype); k += 1
    params["encode_mulogvar"] = (jnp.concatenate([w_mu, w_sig], axis=1),
                                 jnp.concatenate([b_mu, b_sig], axis=1))
    # decoder: Linear(layers[i], layers[i-1]) + ReLU for i = len-1 .. 2
    for i in range(len(layers) - 1, 1, -1):
        params["decoder"].append(
            _init_linear_t(keys[k], layers[i], layers[i - 1], dtype)); k += 1
    # final decoder layer: Linear(layers[1], layers[0]) + Softmax(dim=0)
    params["decoder_out"] = _init_linear_t(keys[k], layers[1], layers[0], dtype); k += 1
    return params


# ---------------------------------------------------------------------------
# Pure-JAX reference (for correctness check)
# ---------------------------------------------------------------------------

def vae_forward_ref(params, x, eps):
    h = x
    for w, b in params["pre_encoder"]:
        h = jnp.maximum(h @ w + b, 0.0)
    ml = h @ params["encode_mulogvar"][0] + params["encode_mulogvar"][1]
    latent = ml.shape[1] // 2
    mu, logvar = ml[:, :latent], ml[:, latent:]
    z = eps * jnp.exp(0.5 * logvar) + mu
    d = z
    for w, b in params["decoder"]:
        d = jnp.maximum(d @ w + b, 0.0)
    y = d @ params["decoder_out"][0] + params["decoder_out"][1]
    return jax.nn.softmax(y, axis=0), mu, logvar


# ---------------------------------------------------------------------------
# main
# ---------------------------------------------------------------------------

if __name__ == "__main__":
    layers = [32, 16, 8]   # input dim 32, hidden 16, latent 8
    batch = 8

    root = jax.random.PRNGKey(0)
    k_params, k_x, k_eps = jax.random.split(root, 3)

    params = init_vae_params(k_params, layers)
    x = jax.random.normal(k_x, (batch, layers[0]), jnp.float32)
    # eps ~ N(0,1): generated in plain JAX for determinism (torch uses a host RNG)
    eps = jax.random.normal(k_eps, (batch, layers[-1]), jnp.float32)

    vae_forward = build_vae_forward(layers)
    out, mu, logvar = vae_forward(params, x, eps)
    jax.block_until_ready((out, mu, logvar))

    # shape checks
    assert out.shape == (batch, layers[0])
    assert mu.shape == (batch, layers[-1])
    assert logvar.shape == (batch, layers[-1])

    # correctness vs. pure-JAX reference (approx reciprocal -> loose-ish tol on out)
    out_r, mu_r, logvar_r = vae_forward_ref(params, x, eps)
    assert jnp.allclose(mu, mu_r, atol=1e-3, rtol=1e-3)
    assert jnp.allclose(logvar, logvar_r, atol=1e-3, rtol=1e-3)
    assert jnp.allclose(out, out_r, atol=5e-3, rtol=5e-3)
    # softmax over dim=0: every column of `out` sums to ~1
    assert jnp.allclose(jnp.sum(out, axis=0), jnp.ones((layers[0],)), atol=5e-3)

    print("KERNEL_OK")
</pallas_src>

<mosaic_0001>
module attributes {stable_mosaic.version = 11 : i64} {
  func.func @kernel(%arg0: memref<8x32xf32, #tpu.memory_space<vmem>>, %arg1: memref<8x8xf32, #tpu.memory_space<vmem>>, %arg2: memref<32x16xf32, #tpu.memory_space<vmem>>, %arg3: memref<1x16xf32, #tpu.memory_space<vmem>>, %arg4: memref<16x16xf32, #tpu.memory_space<vmem>>, %arg5: memref<1x16xf32, #tpu.memory_space<vmem>>, %arg6: memref<8x16xf32, #tpu.memory_space<vmem>>, %arg7: memref<1x16xf32, #tpu.memory_space<vmem>>, %arg8: memref<16x32xf32, #tpu.memory_space<vmem>>, %arg9: memref<1x32xf32, #tpu.memory_space<vmem>>, %arg10: memref<8x32xf32, #tpu.memory_space<vmem>>, %arg11: memref<8x8xf32, #tpu.memory_space<vmem>>, %arg12: memref<8x8xf32, #tpu.memory_space<vmem>>) attributes {dimension_semantics = [], scalar_prefetch = 0 : i64, scratch_operands = 0 : i64, tpu.core_type = #tpu.core_type<tc>} {
    %c0 = arith.constant 0 : index
    %c0_0 = arith.constant 0 : index
    %0 = vector.load %arg0[%c0, %c0_0] : memref<8x32xf32, #tpu.memory_space<vmem>>, vector<8x32xf32>
    %c0_1 = arith.constant 0 : index
    %c0_2 = arith.constant 0 : index
    %1 = vector.load %arg2[%c0_1, %c0_2] : memref<32x16xf32, #tpu.memory_space<vmem>>, vector<32x16xf32>
    %cst = arith.constant dense<0.000000e+00> : vector<8x16xf32>
    %2 = tpu.matmul %0, %1, %cst {dimension_numbers = #tpu.dot_dimension_numbers<[1], [0], [0], [1], [0, 0, 1, 1], [], []>} : vector<8x32xf32>, vector<32x16xf32>, vector<8x16xf32> -> vector<8x16xf32>
    %c0_3 = arith.constant 0 : index
    %c0_4 = arith.constant 0 : index
    %3 = vector.load %arg3[%c0_3, %c0_4] : memref<1x16xf32, #tpu.memory_space<vmem>>, vector<1x16xf32>
    %4 = vector.broadcast %3 : vector<1x16xf32> to vector<8x16xf32>
    %5 = arith.addf %2, %4 : vector<8x16xf32>
    %cst_5 = arith.constant 0.000000e+00 : f32
    %6 = vector.broadcast %cst_5 : f32 to vector<8x16xf32>
    %7 = arith.maximumf %5, %6 : vector<8x16xf32>
    %c0_6 = arith.constant 0 : index
    %c0_7 = arith.constant 0 : index
    %8 = vector.load %arg4[%c0_6, %c0_7] : memref<16x16xf32, #tpu.memory_space<vmem>>, vector<16x16xf32>
    %cst_8 = arith.constant dense<0.000000e+00> : vector<8x16xf32>
    %9 = tpu.matmul %7, %8, %cst_8 {dimension_numbers = #tpu.dot_dimension_numbers<[1], [0], [0], [1], [0, 0, 1, 1], [], []>} : vector<8x16xf32>, vector<16x16xf32>, vector<8x16xf32> -> vector<8x16xf32>
    %c0_9 = arith.constant 0 : index
    %c0_10 = arith.constant 0 : index
    %10 = vector.load %arg5[%c0_9, %c0_10] : memref<1x16xf32, #tpu.memory_space<vmem>>, vector<1x16xf32>
    %11 = vector.broadcast %10 : vector<1x16xf32> to vector<8x16xf32>
    %12 = arith.addf %9, %11 : vector<8x16xf32>
    %13 = vector.extract_strided_slice %12 {offsets = [0, 0], sizes = [8, 8], strides = [1, 1]} : vector<8x16xf32> to vector<8x8xf32>
    %14 = vector.extract_strided_slice %12 {offsets = [0, 8], sizes = [8, 8], strides = [1, 1]} : vector<8x16xf32> to vector<8x8xf32>
    %c0_11 = arith.constant 0 : index
    %c0_12 = arith.constant 0 : index
    %15 = vector.load %arg11[%c0_11, %c0_12] : memref<8x8xf32, #tpu.memory_space<vmem>>, vector<8x8xf32>
    tpu.vector_store %arg11[%c0_11, %c0_12], %13 {strides = array<i32>} : memref<8x8xf32, #tpu.memory_space<vmem>>, vector<8x8xf32>,
    %c0_13 = arith.constant 0 : index
    %c0_14 = arith.constant 0 : index
    %16 = vector.load %arg12[%c0_13, %c0_14] : memref<8x8xf32, #tpu.memory_space<vmem>>, vector<8x8xf32>
    tpu.vector_store %arg12[%c0_13, %c0_14], %14 {strides = array<i32>} : memref<8x8xf32, #tpu.memory_space<vmem>>, vector<8x8xf32>,
    %c0_15 = arith.constant 0 : index
    %c0_16 = arith.constant 0 : index
    %17 = vector.load %arg1[%c0_15, %c0_16] : memref<8x8xf32, #tpu.memory_space<vmem>>, vector<8x8xf32>
    %cst_17 = arith.constant 5.000000e-01 : f32
    %18 = vector.broadcast %cst_17 : f32 to vector<8x8xf32>
    %19 = arith.mulf %18, %14 : vector<8x8xf32>
    %20 = math.exp %19 : vector<8x8xf32>
    %21 = arith.mulf %17, %20 : vector<8x8xf32>
    %22 = arith.addf %21, %13 : vector<8x8xf32>
    %c0_18 = arith.constant 0 : index
    %c0_19 = arith.constant 0 : index
    %23 = vector.load %arg6[%c0_18, %c0_19] : memref<8x16xf32, #tpu.memory_space<vmem>>, vector<8x16xf32>
    %cst_20 = arith.constant dense<0.000000e+00> : vector<8x16xf32>
    %24 = tpu.matmul %22, %23, %cst_20 {dimension_numbers = #tpu.dot_dimension_numbers<[1], [0], [0], [1], [0, 0, 1, 1], [], []>} : vector<8x8xf32>, vector<8x16xf32>, vector<8x16xf32> -> vector<8x16xf32>
    %c0_21 = arith.constant 0 : index
    %c0_22 = arith.constant 0 : index
    %25 = vector.load %arg7[%c0_21, %c0_22] : memref<1x16xf32, #tpu.memory_space<vmem>>, vector<1x16xf32>
    %26 = vector.broadcast %25 : vector<1x16xf32> to vector<8x16xf32>
    %27 = arith.addf %24, %26 : vector<8x16xf32>
    %cst_23 = arith.constant 0.000000e+00 : f32
    %28 = vector.broadcast %cst_23 : f32 to vector<8x16xf32>
    %29 = arith.maximumf %27, %28 : vector<8x16xf32>
    %c0_24 = arith.constant 0 : index
    %c0_25 = arith.constant 0 : index
    %30 = vector.load %arg8[%c0_24, %c0_25] : memref<16x32xf32, #tpu.memory_space<vmem>>, vector<16x32xf32>
    %cst_26 = arith.constant dense<0.000000e+00> : vector<8x32xf32>
    %31 = tpu.matmul %29, %30, %cst_26 {dimension_numbers = #tpu.dot_dimension_numbers<[1], [0], [0], [1], [0, 0, 1, 1], [], []>} : vector<8x16xf32>, vector<16x32xf32>, vector<8x32xf32> -> vector<8x32xf32>
    %c0_27 = arith.constant 0 : index
    %c0_28 = arith.constant 0 : index
    %32 = vector.load %arg9[%c0_27, %c0_28] : memref<1x32xf32, #tpu.memory_space<vmem>>, vector<1x32xf32>
    %33 = vector.broadcast %32 : vector<1x32xf32> to vector<8x32xf32>
    %34 = arith.addf %31, %33 : vector<8x32xf32>
    %cst_29 = arith.constant dense<0xFF800000> : vector<32xf32>
    %35 = vector.multi_reduction <maximumf>, %34, %cst_29 [0] : vector<8x32xf32> to vector<32xf32>
    %36 = vector.shape_cast %35 : vector<32xf32> to vector<1x32xf32>
    %37 = vector.broadcast %36 : vector<1x32xf32> to vector<8x32xf32>
    %38 = arith.subf %34, %37 : vector<8x32xf32>
    %39 = math.exp %38 : vector<8x32xf32>
    %cst_30 = arith.constant dense<0.000000e+00> : vector<32xf32>
    %40 = vector.multi_reduction <add>, %39, %cst_30 [0] : vector<8x32xf32> to vector<32xf32>
    %41 = vector.shape_cast %40 : vector<32xf32> to vector<1x32xf32>
    %42 = tpu.reciprocal %41 {approx = true} : vector<1x32xf32> -> vector<1x32xf32>
    %43 = vector.broadcast %42 : vector<1x32xf32> to vector<8x32xf32>
    %44 = arith.mulf %39, %43 : vector<8x32xf32>
    %c0_31 = arith.constant 0 : index
    %c0_32 = arith.constant 0 : index
    %45 = vector.load %arg10[%c0_31, %c0_32] : memref<8x32xf32, #tpu.memory_space<vmem>>, vector<8x32xf32>
    tpu.vector_store %arg10[%c0_31, %c0_32], %44 {strides = array<i32>} : memref<8x32xf32, #tpu.memory_space<vmem>>, vector<8x32xf32>,
    return
  }
}

</mosaic_0001>

<bundles_post_ra>
// kernel: forward.1
= control target key start
LH: loop header
LB: loop body
LE: loop exit
PB: predicated region body
PF: predicated region fallthrough
CT: control target
= control target key end

     0   :  { %18 = vsyncpa [#allocation3], 0  ;;  %s791_s0 = inlined_call_operand.vmem [shape: f32[8,32], index: 0, kind: input, shape index: {}]   ;;  %s792_s1 = inlined_call_operand.vmem [shape: f32[8,8], index: 1, kind: input, shape index: {}]   ;;  %s793_s2 = inlined_call_operand.vmem [shape: f32[32,16], index: 2, kind: input, shape index: {}]   ;;  %s794_s3 = inlined_call_operand.vmem [shape: f32[1,16], index: 3, kind: input, shape index: {}]   ;;  %s795_s4 = inlined_call_operand.vmem [shape: f32[16,16], index: 4, kind: input, shape index: {}]   ;;  %s796_s5 = inlined_call_operand.vmem [shape: f32[1,16], index: 5, kind: input, shape index: {}]   ;;  %s797_s6 = inlined_call_operand.hbm [shape: f32[8,16], index: 6, kind: input, shape index: {}]   ;;  %s798_s7 = inlined_call_operand.hbm [shape: f32[1,16], index: 7, kind: input, shape index: {}]   ;;  %s799_s8 = inlined_call_operand.vmem [shape: f32[16,32], index: 8, kind: input, shape index: {}]   ;;  %s800_s9 = inlined_call_operand.vmem [shape: f32[1,32], index: 9, kind: input, shape index: {}]   ;;  %s801_s10 = inlined_call_operand.hbm [shape: f32[8,32], index: 10, kind: output, shape index: {0}]   ;;  %s802_s11 = inlined_call_operand.hbm [shape: f32[8,8], index: 11, kind: output, shape index: {1}]   ;;  %s803_s12 = inlined_call_operand.hbm [shape: f32[8,8], index: 12, kind: output, shape index: {2}]  }
   0x1   :  { %19 = vsyncpa [#allocation6], 0 }
   0x2   :  { %20 = vsyncpa [#allocation4], 0 }
   0x3   :  { %21 = vsyncpa [#allocation9], 0  ;;  %s651_s21 = smov [#allocation2]   ;;  %s652_s23 = smov [#allocation5]  }
   0x4   :  { %s40_s22 = sshll.u32 %s651_s21, 4  ;;  %s50_s24 = sshll.u32 %s652_s23, 4  ;;  %s41_s22 = int_to_ptr.vmem [resolvable:$true] %s40_s22  ;;  %s51_s24 = int_to_ptr.vmem [resolvable:$true] %s50_s24 }
   0x5   :  { %s551_s25 = scalar_lea.vmem %s41_s22, 128  ;;  %p556_p1 = scmp.lt.s32.totalorder %s41_s22, %s41_s22 }
   0x6   :  { %p552_p0 = scmp.ne.s32.totalorder %s41_s22, %s551_s25  ;;  %p557_p2 = scmp.lt.s32.totalorder %s551_s25, %s551_s25 }
   0x8   :  { %p558_p3 = por %p557_p2, %p556_p1 }
   0xa   :  { %p559_p4 = pnand %p558_p3, %p552_p0 }
   0xc   :  { %562 = shalt.err (!%p559_p4)
}
   0xd   :  { %43 = dma.hbm_to_vmem [thread:$0]  %s797_s6, 128, %s41_s22, [#allocation3]  }
   0xe   :  { %s571_s28 = scalar_lea.vmem %s51_s24, 16  ;;  %s575_s29 = scalar_lea.vmem %s51_s24, 32 }
   0xf   :  { %p572_p5 = scmp.ne.s32.totalorder %s51_s24, %s571_s28  ;;  %p576_p6 = scmp.lt.s32.totalorder %s51_s24, %s51_s24 }
  0x10   :  { %p577_p7 = scmp.lt.s32.totalorder %s575_s29, %s571_s28 }
  0x12   :  { %p578_p8 = por %p577_p7, %p576_p6 }
  0x14   :  { %p579_p9 = pnand %p578_p8, %p572_p5 }
  0x16   :  { %582 = shalt.err (!%p579_p9)
}
  0x17   :  { %53 = dma.hbm_to_vmem [thread:$0]  %s798_s7, 16, %s51_s24, [#allocation6]  }
  0x18   :  { %643 = dma.done.wait [#allocation3], 128  }
  0x19   :  { %644 = vsyncadd [#allocation3], 4294967168 }
  0x1a   :  { %645 = dma.done.wait [#allocation6], 16  }
  0x1b   :  { %646 = vsyncadd [#allocation6], 4294967280  ;;  %v653_v0 = vmov 0.0   ;;  %vm654_vm0 = vmmov 0   ;;  %v68_v1 = vld [vmem:[%s793_s2 + $0x18] sm:$0xff]  ;;  %v67_v2 = vld [vmem:[%s793_s2 + $0x10] sm:$0xff] }
  0x1c   :  { %499 = vmatprep.subr.mxu0 %v653_v0  ;;  %507 = vmatprep.mubr.msk.f32.mxu0 %vm654_vm0, %v653_v0  ;;  %v66_v3 = vld [vmem:[%s793_s2 + $0x8] sm:$0xff]  ;;  %v65_v4 = vld [vmem:[%s793_s2] sm:$0xff]  ;;  %vm76_vm1 = vcmask 261120   ;;  %vm160_vm2 = vcmask 130048   ;;  %vm234_vm3 = vcmask 64512  }
  0x1d   :  { %510 = vmatprep.subr.mxu1 %v653_v0  ;;  %514 = vmatprep.mubr.msk.f32.mxu1 %vm654_vm0, %v653_v0  ;;  %v64_v5 = vld [vmem:[%s791_s0] sm:$0xff]  ;;  %v152_v6 = vld [vmem:[%s795_s4 + $0x8] sm:$0xff] }
  0x1e   :  { %500 = vmatpush3.msra.mxu0 %v68_v1  ;;  %511 = vmatpush3.msra.mxu1 %v152_v6  ;;  %v151_v7 = vld [vmem:[%s795_s4] sm:$0xff]  ;;  %v334_v26 = vld [vmem:[%s799_s8 + $0x8] sm:$0xff] }
  0x1f   :  { %501 = vmatprep.subr.mxu0 %v653_v0  ;;  %512 = vmatprep.subr.mxu1 %v653_v0  ;;  %v478_v8 = vld [vmem:[%s794_s3] ss:$0 sm:$0xff]  ;;  %s655_s3 = smov 120   ;;  %v482_v28 = vld [vmem:[#allocation5] ss:$0 sm:$0xff] }
  0x20   :  { %502 = vmatpush3.msra.mxu0 %v67_v2  ;;  %513 = vmatpush3.msra.mxu1 %v151_v7  ;;  %v480_v13 = vld [vmem:[%s796_s5] ss:$0 sm:$0xff] }
  0x21   :  { %503 = vmatprep.subr.mxu0 %v653_v0  ;;  %517 = vmatprep.subr.mxu1 %v653_v0  ;;  %v251_v19 = vld [vmem:[#allocation2] sm:$0xff] }
  0x22   :  { %504 = vmatpush3.msra.mxu0 %v66_v3  ;;  %v241_v21 = vld [vmem:[%s792_s1] sm:$0xff]  ;;  %s656_s1 = smov [#allocation8]  }
  0x23   :  { %505 = vmatprep.subr.mxu0 %v653_v0  ;;  %v333_v27 = vld [vmem:[%s799_s8] sm:$0xff]  ;;  %s451_s6 = sshll.u32 %s656_s1, 4  ;;  %s452_s6 = int_to_ptr.vmem [resolvable:$true] %s451_s6 }
  0x24   :  { %506 = vmatpush3.msra.mxu0 %v65_v4  ;;  %s583_s14 = scalar_lea.vmem %s452_s6, 128  ;;  %p588_p11 = scmp.lt.s32.totalorder %s452_s6, %s452_s6 }
  0x25   :  { %508 = vmatmul.mubr.msk.f32.vlgmr.msra.gmra.mxu0 %vm76_vm1, %v64_v5  ;;  %522 = vmatprep.subr.mxu0 %v653_v0  ;;  %p584_p10 = scmp.ne.s32.totalorder %s452_s6, %s583_s14  ;;  %p589_p12 = scmp.lt.s32.totalorder %s583_s14, %s583_s14 }
  0x26   :  { %526 = vmatprep.mubr.msk.f32.mxu0 %vm654_vm0, %v653_v0  ;;  %523 = vmatpush3.msra.mxu0 %v334_v26 }
  0x27   :  { %524 = vmatprep.subr.mxu0 %v653_v0  ;;  %p590_p13 = por %p589_p12, %p588_p11 }
  0x28   :  { %525 = vmatpush3.msra.mxu0 %v333_v27 }
  0x29   :  { %p591_p0 = pnand %p590_p13, %p584_p10 }
  0xe5   :  { %v146_v9 = vpop.f32.mrf.mxu0 }
  0xe6   :  { %v147_v10 = vadd.f32 %v478_v8, %v146_v9 }
  0xe7   :  { %v509_v11 = vpop.f32.mrf.mxu0 }
  0xe8   :  { %v150_v12 = vmax.f32 %v147_v10, 0.0 }
  0xea   :  { %515 = vmatmul.mubr.msk.f32.vlgmr.msra.gmra.mxu1 %vm160_vm2, %v150_v12 }
  0xeb   :  { %519 = vmatprep.mubr.msk.f32.mxu1 %vm654_vm0, %v653_v0  ;;  %518 = vmatpush3.msra.mxu1 %v251_v19 }
 0x1aa   :  { %v230_v14 = vpop.f32.mrf.mxu1 }
 0x1ab   :  { %v231_v15 = vadd.f32 %v480_v13, %v230_v14 }
 0x1ac   :  { %v516_v16 = vpop.f32.mrf.mxu1 }
 0x1ad   :  { %v242_v17 = vmul.f32 0.5, %v231_v15  ;;  %235 = vst.msk [vmem:[#allocation8] sm:$0xff] %vm234_vm3, %v231_v15 }
 0x1af   :  { %v243_v18 = vmul.f32 1.442695, %v242_v17 }
 0x1b1   :  { %537 = vpow2.f32 %v243_v18 }
 0x1be   :  { %v538_v20 = vpop.eup %537 }
 0x1bf   :  { %246 = vrot.lane.b32.xlu0 %v538_v20, %s655_s3 }
 0x1c3   :  { %237 = vrot.lane.b32.xlu0 %v231_v15, %s655_s3 }
 0x231   :  { %v247_v22 = vpop.permute.xlu0 %246 }
 0x232   :  { %v249_v23 = vmul.f32 %v247_v22, %v241_v21 }
 0x234   :  { %v250_v24 = vadd.f32 %v249_v23, %v231_v15 }
 0x235   :  { %v238_v25 = vpop.permute.xlu0 %237 }
 0x236   :  { %240 = vst.msk [vmem:[#allocation10] sm:$0xff] %vm234_vm3, %v238_v25  ;;  %520 = vmatmul.mubr.msk.f32.vlgmr.msra.gmra.mxu1 %vm234_vm3, %v250_v24 }
 0x2f6   :  { %v328_v29 = vpop.f32.mrf.mxu1 }
 0x2f7   :  { %v329_v30 = vadd.f32 %v482_v28, %v328_v29 }
 0x2f8   :  { %v521_v31 = vpop.f32.mrf.mxu1 }
 0x2f9   :  { %v332_v32 = vmax.f32 %v329_v30, 0.0 }
 0x2fb   :  { %527 = vmatmul.mubr.msk.f32.vlgmr.msra.gmra.mxu0 %vm160_vm2, %v332_v32 }
 0x2fc   :  { %594 = shalt.err (!%p591_p0)
}
 0x2fd   :  { %454 = dma.vmem_to_hbm [thread:$0]  %s452_s6, 128, %s802_s11, [#allocation9]  }
 0x2fe   :  { %s657_s16 = smov [#allocation10]  }
 0x2ff   :  { %s461_s7 = sshll.u32 %s657_s16, 4  ;;  %s462_s7 = int_to_ptr.vmem [resolvable:$true] %s461_s7 }
 0x300   :  { %s603_s17 = scalar_lea.vmem %s462_s7, 128  ;;  %p608_p2 = scmp.lt.s32.totalorder %s462_s7, %s462_s7 }
 0x301   :  { %p604_p1 = scmp.ne.s32.totalorder %s462_s7, %s603_s17  ;;  %p609_p3 = scmp.lt.s32.totalorder %s603_s17, %s603_s17 }
 0x303   :  { %p610_p4 = por %p609_p3, %p608_p2 }
 0x305   :  { %p611_p5 = pnand %p610_p4, %p604_p1 }
 0x307   :  { %614 = shalt.err (!%p611_p5)
}
 0x308   :  { %464 = dma.vmem_to_hbm [thread:$0]  %s462_s7, 128, %s803_s12, [#allocation9]   ;;  %v484_v33 = vld [vmem:[%s800_s9] ss:$0 sm:$0xff] }
 0x309   :  { %s658_s9 = smov [#allocation7]  }
 0x30a   :  { %s441_s11 = sshll.u32 %s658_s9, 4  ;;  %s442_s11 = int_to_ptr.vmem [resolvable:$true] %s441_s11 }
 0x30b   :  { %s623_s12 = scalar_lea.vmem %s442_s11, 128  ;;  %p628_p7 = scmp.lt.s32.totalorder %s442_s11, %s442_s11 }
 0x30c   :  { %p624_p6 = scmp.ne.s32.totalorder %s442_s11, %s623_s12  ;;  %p629_p8 = scmp.lt.s32.totalorder %s623_s12, %s623_s12 }
 0x30e   :  { %p630_p9 = por %p629_p8, %p628_p7 }
 0x310   :  { %p631_p10 = pnand %p630_p9, %p624_p6 }
 0x3bb   :  { %v411_v34 = vpop.f32.mrf.mxu0 }
 0x3bc   :  { %v412_v35 = vadd.f32 %v484_v33, %v411_v34 }
 0x3bd   :  { %v528_v36 = vpop.f32.mrf.mxu0 }
 0x3be   :  { %v415_v37 = vsel %vm76_vm1, %v412_v35, -inf }
 0x3bf   :  { %v416_v38 = vrot.slane %v415_v37, 4 }
 0x3c1   :  { %v417_v39 = vmax.f32 %v415_v37, %v416_v38 }
 0x3c3   :  { %v418_v40 = vrot.slane %v417_v39, 2 }
 0x3c5   :  { %v419_v41 = vmax.f32 %v417_v39, %v418_v40 }
 0x3c7   :  { %v420_v42 = vrot.slane %v419_v41, 1 }
 0x3c9   :  { %v421_v43 = vmax.f32 %v419_v41, %v420_v42 }
 0x3cb   :  { %v422_v44 = vsub.f32 %v412_v35, %v421_v43 }
 0x3cd   :  { %v423_v45 = vmul.f32 1.442695, %v422_v44 }
 0x3cf   :  { %539 = vpow2.f32 %v423_v45 }
 0x3dc   :  { %v540_v46 = vpop.eup %539 }
 0x3dd   :  { %v425_v47 = vsel %vm76_vm1, %v540_v46, 0.0 }
 0x3de   :  { %v426_v48 = vrot.slane %v425_v47, 4 }
 0x3e0   :  { %v427_v49 = vadd.f32 %v426_v48, %v425_v47 }
 0x3e2   :  { %v428_v50 = vrot.slane %v427_v49, 2 }
 0x3e4   :  { %v429_v51 = vadd.f32 %v428_v50, %v427_v49 }
 0x3e6   :  { %v430_v52 = vrot.slane %v429_v51, 1 }
 0x3e8   :  { %v431_v53 = vadd.f32 %v430_v52, %v429_v51 }
 0x3ea   :  { %541 = vrcp.f32 %v431_v53 }
 0x3f7   :  { %v542_v54 = vpop.eup %541 }
 0x3f8   :  { %v433_v55 = vmul.f32 %v542_v54, %v540_v46 }
 0x3fa   :  { %434 = vst.msk [vmem:[#allocation7] sm:$0xff] %vm76_vm1, %v433_v55 }
 0x3fb   :  { %634 = shalt.err (!%p631_p10)
}
 0x3fc   :  { %444 = dma.vmem_to_hbm [thread:$0]  %s442_s11, 128, %s801_s10, [#allocation4]  }
 0x3fd   :  { %647 = dma.done.wait [#allocation4], 128  }
 0x3fe   :  { %648 = vsyncadd [#allocation4], 4294967168 }
 0x3ff   :  { %649 = dma.done.wait [#allocation9], 256  }
 0x400   :  { %650 = vsyncadd [#allocation9], 4294967040 }
 0x401   :  { %474 = vsyncpa [#allocation3], 1 }
 0x402   :  { %475 = vsyncpa [#allocation6], 1 }
 0x403   :  { %476 = vsyncpa [#allocation4], 1 }
 0x404   :  { %477 = vsyncpa [#allocation9], 1 }

</bundles_post_ra>
